<compile_context>
chip_gen: v7x
topology: tpu7x:2x2x1
jax: 0.10.0
libtpu: 0.0.40
codegen_flags: <defaults>
</compile_context>

<pallas_src>
import jax
import jax.numpy as jnp
from jax.experimental import pallas as pl
from jax.experimental.pallas import tpu as pltpu


def _cdiv(a, b):
    return -(-a // b)


# ---------------------------------------------------------------------------
# Kernel bodies
# ---------------------------------------------------------------------------
def _copy_tile_kernel(x_ref, o_ref):
    # Whole forward is a pass-through: stream the tile in -> out.  The lane dim
    # is a multiple of 128, so this lowers to unmasked full-lane vst.
    o_ref[...] = x_ref[...]


def _dma_identity_kernel(x_hbm, o_hbm, sem):
    # Single direct HBM->HBM copy: DMA engine streams it, no VMEM round trip.
    cp = pltpu.make_async_copy(x_hbm, o_hbm, sem)
    cp.start()
    cp.wait()


def _aliased_noop_kernel(x_hbm, o_hbm):
    # Input buffer is aliased to the output; the bytes are already in place.
    # Just pin the dependency — zero HBM traffic.
    pltpu.touch(o_hbm)


# ---------------------------------------------------------------------------
# Tiling helpers
# ---------------------------------------------------------------------------
_TILE_TARGET_BYTES = 4 * 1024 * 1024     # ~4 MiB tiles -> 4 pipelined bufs ~= 16 MiB VMEM
_VMEM_LIMIT_BYTES = 48 * 1024 * 1024     # explicit; fits v5e/v6e (128 MiB) and v7x (64 MiB)


def _lane_dense_2d(x):
    """Reshape x into a lane-dense (rows, lane) slab with lane % 128 == 0 when
    possible.  Lane widths that are not multiples of 128 force masked vst.msk
    partial stores + padded DMAs — the biggest measured store-path penalty."""
    total = int(x.size)
    code = int(x.shape[-1]) if x.ndim else 1
    if code >= 128 and code % 128 == 0:
        return x.reshape(total // code, code)
    for lane in (2048, 1024, 512, 256, 128):
        if total >= lane and total % lane == 0:
            return x.reshape(total // lane, lane)
    # TODO(synk): totals not divisible by 128 fall back to a masked (rows, code)
    # layout; still bit-exact, just slower stores.
    code = max(code, 1)
    return x.reshape(total // code, code)


def _choose_row_tile(rows, lane, dtype):
    """Dtype-aware row tile: ~4 MiB per tile (amortizes the ~0.35 us per-step
    overhead even at v7x bandwidth), capped only by the padded row count, and
    halved if needed so a mid-size input still yields >=2 grid steps for the
    two v7x TensorCores."""
    itemsize = int(jnp.dtype(dtype).itemsize)
    # Sublane granularity: 8 rows for 4-byte, 16 for 2-byte, 32 for 1-byte dtypes.
    sublane = max(8, 32 // max(itemsize, 1))
    row_bytes = max(lane * itemsize, 1)
    tile = max(sublane, (_TILE_TARGET_BYTES // row_bytes) // sublane * sublane)
    rows_padded = _cdiv(rows, sublane) * sublane
    tile = min(tile, rows_padded)
    # Prefer >=2 "parallel" steps when the slab is big enough to be worth splitting.
    while _cdiv(rows, tile) < 2 and tile > sublane and tile * row_bytes > (1 << 20):
        tile = max(sublane, (tile // 2) // sublane * sublane)
    return int(tile)


# ---------------------------------------------------------------------------
# Public forward
# ---------------------------------------------------------------------------
def embeddings_forward(x, *, use_pallas=True, copy_impl="tiled",
                       min_pallas_bytes=256 * 1024):
    """Pallas implementation of Embeddings.forward (identity).

    Recommended production path: return x (use_pallas=False or tiny inputs) —
    an identity needs no HBM traffic at all.  The kernel paths exist for
    interface parity / benchmarking and do NOT alias the input, so x stays
    valid for the caller.
    """
    total = int(x.size)
    itemsize = int(jnp.dtype(x.dtype).itemsize)
    total_bytes = total * itemsize
    if not use_pallas or total == 0 or total_bytes < min_pallas_bytes:
        # Launching any kernel for a tiny slab is pure overhead.
        return x

    cost = pl.CostEstimate(flops=0, transcendentals=0,
                           bytes_accessed=2 * total_bytes)

    if copy_impl == "dma":
        return pl.pallas_call(
            _dma_identity_kernel,
            out_shape=jax.ShapeDtypeStruct(x.shape, x.dtype),
            in_specs=[pl.BlockSpec(memory_space=pl.ANY)],
            out_specs=pl.BlockSpec(memory_space=pl.ANY),
            scratch_shapes=[pltpu.SemaphoreType.DMA(())],
            cost_estimate=cost,
        )(x)

    # Tiled, pipelined VMEM copy (lane-dense layout).
    orig_shape = x.shape
    x2d = _lane_dense_2d(x)
    rows, lane = int(x2d.shape[0]), int(x2d.shape[1])
    row_tile = _choose_row_tile(rows, lane, x.dtype)
    grid = (_cdiv(rows, row_tile),)

    out2d = pl.pallas_call(
        _copy_tile_kernel,
        out_shape=jax.ShapeDtypeStruct((rows, lane), x2d.dtype),
        grid_spec=pltpu.PrefetchScalarGridSpec(
            num_scalar_prefetch=0,
            grid=grid,
            in_specs=[pl.BlockSpec((row_tile, lane), lambda i: (i, 0))],
            out_specs=pl.BlockSpec((row_tile, lane), lambda i: (i, 0)),
        ),
        compiler_params=pltpu.CompilerParams(
            # Row axis is fully independent -> shardable across v7x's 2 TCs.
            dimension_semantics=("parallel",),
            vmem_limit_bytes=_VMEM_LIMIT_BYTES,
        ),
        # Pure memory traffic: read + write of the whole slab, zero FLOPs.
        cost_estimate=cost,
    )(x2d)
    return out2d.reshape(orig_shape)


def embeddings_forward_donated(x):
    """Zero-traffic identity for callers that GENUINELY donate x (jax.jit
    donate_argnums, or x is a dead intermediate inside a larger jit): the input
    HBM buffer is aliased to the output and the body only pins the dependency —
    no bytes move.  Do NOT use if x stays live in the caller; XLA would insert
    a defensive copy and make things strictly worse than not aliasing."""
    return pl.pallas_call(
        _aliased_noop_kernel,
        out_shape=jax.ShapeDtypeStruct(x.shape, x.dtype),
        in_specs=[pl.BlockSpec(memory_space=pl.ANY)],
        out_specs=pl.BlockSpec(memory_space=pl.ANY),
        input_output_aliases={0: 0},
        compiler_params=pltpu.CompilerParams(has_side_effects=True),
        cost_estimate=pl.CostEstimate(flops=0, transcendentals=0, bytes_accessed=0),
    )(x)


if __name__ == "__main__":
    # Module __init__ only stores code_size; there are no parameters to create.
    code_size = 1280
    batch, seq = 2, 8

    key = jax.random.PRNGKey(0)
    x = jax.random.normal(key, (batch, seq, code_size), dtype=jnp.float32)

    # Recommended path for an identity: no kernel launch, no HBM traffic.
    y_bypass = embeddings_forward(x)
    # Force the two kernel paths so they are exercised on hardware.
    y_tiled = embeddings_forward(x, min_pallas_bytes=0)                  # BlockSpec pipeline copy
    y_dma = embeddings_forward(x, copy_impl="dma", min_pallas_bytes=0)   # HBM->HBM DMA copy
    jax.block_until_ready((y_bypass, y_tiled, y_dma))

    # Verify exact pass-through semantics (shape, dtype, values); x is never
    # donated/aliased on these paths, so it remains valid here.
    for y in (y_bypass, y_tiled, y_dma):
        assert y.shape == x.shape
        assert y.dtype == x.dtype
        assert bool(jnp.all(y == x))

    print("KERNEL_OK")
</pallas_src>

<mosaic_0001>
module attributes {stable_mosaic.version = 11 : i64} {
  func.func @_copy_tile_kernel(%arg0: i32, %arg1: memref<16x1280xf32, #tpu.memory_space<vmem>>, %arg2: memref<16x1280xf32, #tpu.memory_space<vmem>>) attributes {dimension_semantics = [#tpu.dimension_semantics<parallel>], iteration_bounds = array<i64: 1>, scalar_prefetch = 0 : i64, scratch_operands = 0 : i64, tpu.core_type = #tpu.core_type<tc>, window_params = [{transform_indices = @transform_0, window_bounds = array<i64: 16, 1280>}, {transform_indices = @transform_1, window_bounds = array<i64: 16, 1280>}]} {
    %c0 = arith.constant 0 : index
    %c0_0 = arith.constant 0 : index
    %0 = vector.load %arg1[%c0, %c0_0] : memref<16x1280xf32, #tpu.memory_space<vmem>>, vector<16x1280xf32>
    %c0_1 = arith.constant 0 : index
    %c0_2 = arith.constant 0 : index
    %1 = vector.load %arg2[%c0_1, %c0_2] : memref<16x1280xf32, #tpu.memory_space<vmem>>, vector<16x1280xf32>
    tpu.vector_store %arg2[%c0_1, %c0_2], %0 {strides = array<i32>} : memref<16x1280xf32, #tpu.memory_space<vmem>>, vector<16x1280xf32>,
    return
  }
  func.func @transform_0(%arg0: i32) -> (i32, i32) {
    %c0_i32 = arith.constant 0 : i32
    %c0_i32_0 = arith.constant 0 : i32
    return %arg0, %c0_i32 : i32, i32
  }
  func.func @transform_1(%arg0: i32) -> (i32, i32) {
    %c0_i32 = arith.constant 0 : i32
    %c0_i32_0 = arith.constant 0 : i32
    return %arg0, %c0_i32 : i32, i32
  }
}

</mosaic_0001>

<bundles_post_ra>
// kernel: tpu_custom_call.1
= control target key start
LH: loop header
LB: loop body
LE: loop exit
PB: predicated region body
PF: predicated region fallthrough
CT: control target
= control target key end

     0   :  { %6 = vsyncpa [#allocation3], 0  ;;  %s176_s0 = inlined_call_operand.hbm [shape: f32[16,1280], index: 0, kind: input, shape index: {}]   ;;  %s177_s1 = inlined_call_operand.hbm [shape: f32[16,1280], index: 1, kind: output, shape index: {}]  }
   0x1   :  { %7 = vsyncpa [#allocation4], 0  ;;  %s132_s6 = smov [#allocation2]   ;;  %s84_s10 = scalar_lea.hbm %s176_s0, 2560 }
   0x2   :  { %s13_s7 = sshll.u32 %s132_s6, 4  ;;  %p85_p0 = scmp.ne.s32.totalorder %s176_s0, %s84_s10  ;;  %s14_s7 = int_to_ptr.vmem [resolvable:$true] %s13_s7 }
   0x3   :  { %p88_p1 = scmp.lt.u32.totalorder %s84_s10, %s176_s0 }
   0x5   :  { %p90_p2 = pnand %p88_p1, %p85_p0 }
   0x7   :  { %93 = shalt.err (!%p90_p2)
}
   0x8   :  { %s94_s15 = scalar_lea.vmem %s14_s7, 2560  ;;  %p99_p4 = scmp.lt.s32.totalorder %s14_s7, %s14_s7 }
   0x9   :  { %p95_p3 = scmp.ne.s32.totalorder %s14_s7, %s94_s15  ;;  %p100_p5 = scmp.lt.s32.totalorder %s94_s15, %s94_s15 }
   0xb   :  { %p101_p6 = por %p100_p5, %p99_p4 }
   0xd   :  { %p102_p7 = pnand %p101_p6, %p95_p3 }
   0xf   :  { %105 = shalt.err (!%p102_p7)
}
  0x10   :  { %s133_s16 = smov 1280   ;;  %s134_s17 = smov 80  }
  0x11   :  { %19 = dma.hbm_to_vmem [thread:$0]  %s176_s0, 2560, %s14_s7, [#allocation3], %s133_s16, %s133_s16, %s134_s17  }
  0x12   :  { %128 = dma.done.wait [#allocation3], 2560  }
  0x13   :  { %129 = vsyncadd [#allocation3], 4294964736  ;;  %v23_v0 = vld [vmem:[#allocation2] sm:$0xff]  ;;  %v24_v1 = vld [vmem:[#allocation2 + $0x8] sm:$0xff]  ;;  %s135_s20 = smov [#allocation5]  }
  0x14   :  { %v25_v2 = vld [vmem:[#allocation2 + $0x10] sm:$0xff]  ;;  %43 = vst [vmem:[#allocation5] sm:$0xff] %v23_v0  ;;  %44 = vst [vmem:[#allocation5 + $0x8] sm:$0xff] %v24_v1  ;;  %v26_v3 = vld [vmem:[#allocation2 + $0x18] sm:$0xff]  ;;  %s68_s21 = sshll.u32 %s135_s20, 4  ;;  %s69_s21 = int_to_ptr.vmem [resolvable:$true] %s68_s21 }
  0x15   :  { %45 = vst [vmem:[#allocation5 + $0x10] sm:$0xff] %v25_v2  ;;  %v27_v4 = vld [vmem:[#allocation2 + $0x20] sm:$0xff]  ;;  %v28_v5 = vld [vmem:[#allocation2 + $0x28] sm:$0xff]  ;;  %46 = vst [vmem:[#allocation5 + $0x18] sm:$0xff] %v26_v3  ;;  %s106_s0 = scalar_lea.vmem %s69_s21, 2560  ;;  %p111_p9 = scmp.lt.s32.totalorder %s69_s21, %s69_s21 }
  0x16   :  { %47 = vst [vmem:[#allocation5 + $0x20] sm:$0xff] %v27_v4  ;;  %48 = vst [vmem:[#allocation5 + $0x28] sm:$0xff] %v28_v5  ;;  %v29_v6 = vld [vmem:[#allocation2 + $0x30] sm:$0xff]  ;;  %v30_v7 = vld [vmem:[#allocation2 + $0x38] sm:$0xff]  ;;  %p107_p8 = scmp.ne.s32.totalorder %s69_s21, %s106_s0  ;;  %p112_p10 = scmp.lt.s32.totalorder %s106_s0, %s106_s0 }
  0x17   :  { %v31_v8 = vld [vmem:[#allocation2 + $0x40] sm:$0xff]  ;;  %49 = vst [vmem:[#allocation5 + $0x30] sm:$0xff] %v29_v6  ;;  %50 = vst [vmem:[#allocation5 + $0x38] sm:$0xff] %v30_v7  ;;  %v32_v9 = vld [vmem:[#allocation2 + $0x48] sm:$0xff] }
  0x18   :  { %51 = vst [vmem:[#allocation5 + $0x40] sm:$0xff] %v31_v8  ;;  %v33_v10 = vld [vmem:[#allocation2 + $0x50] sm:$0xff]  ;;  %v34_v11 = vld [vmem:[#allocation2 + $0x58] sm:$0xff]  ;;  %52 = vst [vmem:[#allocation5 + $0x48] sm:$0xff] %v32_v9  ;;  %p113_p11 = por %p112_p10, %p111_p9 }
  0x19   :  { %53 = vst [vmem:[#allocation5 + $0x50] sm:$0xff] %v33_v10  ;;  %54 = vst [vmem:[#allocation5 + $0x58] sm:$0xff] %v34_v11  ;;  %v35_v12 = vld [vmem:[#allocation2 + $0x60] sm:$0xff]  ;;  %v36_v13 = vld [vmem:[#allocation2 + $0x68] sm:$0xff] }
  0x1a   :  { %v37_v14 = vld [vmem:[#allocation2 + $0x70] sm:$0xff]  ;;  %55 = vst [vmem:[#allocation5 + $0x60] sm:$0xff] %v35_v12  ;;  %56 = vst [vmem:[#allocation5 + $0x68] sm:$0xff] %v36_v13  ;;  %v38_v15 = vld [vmem:[#allocation2 + $0x78] sm:$0xff]  ;;  %p114_p12 = pnand %p113_p11, %p107_p8 }
  0x1b   :  { %57 = vst [vmem:[#allocation5 + $0x70] sm:$0xff] %v37_v14  ;;  %v39_v16 = vld [vmem:[#allocation2 + $0x80] sm:$0xff]  ;;  %v40_v17 = vld [vmem:[#allocation2 + $0x88] sm:$0xff]  ;;  %58 = vst [vmem:[#allocation5 + $0x78] sm:$0xff] %v38_v15 }
  0x1c   :  { %59 = vst [vmem:[#allocation5 + $0x80] sm:$0xff] %v39_v16  ;;  %60 = vst [vmem:[#allocation5 + $0x88] sm:$0xff] %v40_v17  ;;  %v41_v18 = vld [vmem:[#allocation2 + $0x90] sm:$0xff]  ;;  %v42_v19 = vld [vmem:[#allocation2 + $0x98] sm:$0xff] }
  0x1d   :  { %61 = vst [vmem:[#allocation5 + $0x90] sm:$0xff] %v41_v18  ;;  %62 = vst [vmem:[#allocation5 + $0x98] sm:$0xff] %v42_v19 }
  0x1e   :  { %117 = shalt.err (!%p114_p12)
}
  0x1f   :  { %s118_s24 = scalar_lea.hbm %s177_s1, 2560 }
  0x20   :  { %p119_p13 = scmp.ne.s32.totalorder %s177_s1, %s118_s24  ;;  %p122_p0 = scmp.lt.u32.totalorder %s118_s24, %s177_s1 }
  0x22   :  { %p124_p1 = pnand %p122_p0, %p119_p13 }
  0x24   :  { %127 = shalt.err (!%p124_p1)
}
  0x25   :  { %74 = dma.vmem_to_hbm [thread:$0]  %s69_s21, 2560, %s177_s1, [#allocation4], %s133_s16, %s133_s16, %s134_s17  }
  0x26   :  { %130 = dma.done.wait [#allocation4], 2560  }
  0x27   :  { %131 = vsyncadd [#allocation4], 4294964736 }
  0x28   :  { %78 = vsyncpa [#allocation3], 1 }
  0x29   :  { %79 = vsyncpa [#allocation4], 1 }

</bundles_post_ra>
